<compile_context>
chip_gen: v7x
topology: tpu7x:2x2x1
jax: 0.10.0
libtpu: 0.0.40
codegen_flags: <defaults>
</compile_context>

<pallas_src>
import functools

import jax
import jax.numpy as jnp
from jax.experimental import pallas as pl
from jax.experimental.pallas import tpu as pltpu


def _round_up(x, m):
    return (x + m - 1) // m * m


# ---------------------------------------------------------------------------
# Fused MLP kernel: one pallas_call for the whole forward pass.
# refs = (x, w0, b0, w1, b1, ..., w_last, b_last, out)
# ---------------------------------------------------------------------------
def _mlp_fused_kernel(*refs, n_layers, compute_dtype):
    x_ref = refs[0]
    o_ref = refs[-1]
    wb_refs = refs[1:-1]                      # 2 * (n_layers + 1) refs

    h = x_ref[...].astype(compute_dtype)      # activations stay on-chip
    for layer in range(n_layers):
        w = wb_refs[2 * layer][...]           # bf16 weights, resident in VMEM
        b = wb_refs[2 * layer + 1][...]       # (1, hidden) f32 bias
        y = jnp.dot(h, w, preferred_element_type=jnp.float32) + b
        y = jnp.maximum(y, 0.0)               # f32 epilogue (VPU, v5e-safe)
        h = y.astype(compute_dtype)
    w_last = wb_refs[-2][...]
    b_last = wb_refs[-1][...]
    out = jnp.dot(h, w_last, preferred_element_type=jnp.float32) + b_last
    o_ref[...] = out.astype(o_ref.dtype)      # lane-dense (N padded to 128)


# ---------------------------------------------------------------------------
# Tiled fallback: fused matmul + bias (+ReLU) with f32 accumulator scratch.
# Used per-layer only when the fused whole-tensor path would not fit VMEM.
# ---------------------------------------------------------------------------
def _linear_tiled_kernel(x_ref, w_ref, b_ref, o_ref, acc_ref, *, apply_relu):
    @pl.when(pl.program_id(2) == 0)
    def _():
        acc_ref[...] = jnp.zeros_like(acc_ref)

    acc_ref[...] += jnp.dot(x_ref[...], w_ref[...],
                            preferred_element_type=jnp.float32)

    @pl.when(pl.program_id(2) == pl.num_programs(2) - 1)
    def _():
        y = acc_ref[...] + b_ref[...]         # f32 epilogue
        if apply_relu:
            y = jnp.maximum(y, 0.0)
        o_ref[...] = y.astype(o_ref.dtype)


def _pick_tile(dim, pref):
    """Largest of (pref, full-extent) that divides dim (full extent always ok)."""
    return pref if dim % pref == 0 else dim


def linear_pallas_tiled(x, w, b, *, apply_relu, tm=128, tn=128, tk=256):
    """x: (M, K), w: (K, N), b: (N,) f32 -> (M, N) f32. K-last reduction grid."""
    M, K = x.shape
    K2, N = w.shape
    assert K == K2
    tm = _pick_tile(M, min(tm, M))
    tn = _pick_tile(N, min(tn, N))
    tk = _pick_tile(K, min(tk, K))
    b2 = b.reshape(1, N).astype(jnp.float32)
    return pl.pallas_call(
        functools.partial(_linear_tiled_kernel, apply_relu=apply_relu),
        out_shape=jax.ShapeDtypeStruct((M, N), jnp.float32),
        grid_spec=pltpu.PrefetchScalarGridSpec(
            num_scalar_prefetch=0,
            grid=(M // tm, N // tn, K // tk),
            in_specs=[pl.BlockSpec((tm, tk), lambda i, j, k: (i, k)),
                      pl.BlockSpec((tk, tn), lambda i, j, k: (k, j)),
                      pl.BlockSpec((1, tn), lambda i, j, k: (0, j))],
            out_specs=pl.BlockSpec((tm, tn), lambda i, j, k: (i, j)),
            scratch_shapes=[pltpu.VMEM((tm, tn), jnp.float32)]),
        compiler_params=pltpu.CompilerParams(
            dimension_semantics=("parallel", "parallel", "arbitrary"),
            # Explicit budget: safe on v7x (64 MiB physical) and v5e/v6e.
            vmem_limit_bytes=32 * 1024 * 1024),
    )(x, w, b2)


# ---------------------------------------------------------------------------
# Parameters (weights kept as (in_dim, out_dim) == PyTorch weight.T; bf16).
# ---------------------------------------------------------------------------
def init_mlp_params(key, *, out_dim, in_channel, img_sz, n_layers, hidden_dim,
                    weight_dtype=jnp.bfloat16):
    in_dim = in_channel * img_sz * img_sz
    params = []
    d_in = in_dim
    for _ in range(n_layers):
        key, kw, kb = jax.random.split(key, 3)
        bound = 1.0 / jnp.sqrt(jnp.float32(d_in))
        w = jax.random.uniform(kw, (d_in, hidden_dim), jnp.float32, -bound, bound)
        b = jax.random.uniform(kb, (hidden_dim,), jnp.float32, -bound, bound)
        params.append((w.astype(weight_dtype), b))
        d_in = hidden_dim
    key, kw, kb = jax.random.split(key, 3)
    bound = 1.0 / jnp.sqrt(jnp.float32(d_in))
    w_last = jax.random.uniform(kw, (d_in, out_dim), jnp.float32, -bound, bound)
    b_last = jax.random.uniform(kb, (out_dim,), jnp.float32, -bound, bound)
    return params, (w_last.astype(weight_dtype), b_last), in_dim


# ---------------------------------------------------------------------------
# Forward pass (matches MLP.forward: view(-1, in_dim) -> net -> last).
# ---------------------------------------------------------------------------
_FUSED_VMEM_BUDGET_BYTES = 8 * 1024 * 1024   # conservative (fits v7x scoped VMEM)


def mlp_forward(x, params, last, in_dim, *, compute_dtype=jnp.bfloat16):
    h0 = x.reshape(-1, in_dim)                       # x.view(-1, in_dim)
    M = h0.shape[0]
    M_pad = _round_up(max(M, 1), 8)                  # sublane-align rows
    if M_pad != M:
        h0 = jnp.pad(h0, ((0, M_pad - M), (0, 0)))

    w_last, b_last = last
    out_dim = w_last.shape[1]
    N_pad = _round_up(out_dim, 128)                  # lane-dense final store
    if N_pad != out_dim:
        w_last = jnp.pad(w_last, ((0, 0), (0, N_pad - out_dim)))
        b_last = jnp.pad(b_last, (0, N_pad - out_dim))

    all_layers = list(params) + [(w_last, b_last)]

    # Rough VMEM footprint of the fused whole-tensor path.
    total_bytes = h0.size * h0.dtype.itemsize + M_pad * N_pad * 4
    for (w, b) in all_layers:
        total_bytes += w.size * w.dtype.itemsize + b.size * 4

    if total_bytes <= _FUSED_VMEM_BUDGET_BYTES:
        # --- fused path: one pallas_call for the whole MLP -----------------
        operands = [h0]
        in_specs = [pl.BlockSpec(h0.shape, lambda i: (0, 0))]
        for (w, b) in all_layers:
            b2 = b.reshape(1, -1).astype(jnp.float32)
            operands += [w, b2]
            in_specs += [pl.BlockSpec(w.shape, lambda i: (0, 0)),
                         pl.BlockSpec(b2.shape, lambda i: (0, 0))]
        out = pl.pallas_call(
            functools.partial(_mlp_fused_kernel, n_layers=len(params),
                              compute_dtype=compute_dtype),
            out_shape=jax.ShapeDtypeStruct((M_pad, N_pad), jnp.float32),
            grid=(1,),
            in_specs=in_specs,
            out_specs=pl.BlockSpec((M_pad, N_pad), lambda i: (0, 0)),
            compiler_params=pltpu.CompilerParams(
                dimension_semantics=("arbitrary",)),
        )(*operands)
    else:
        # --- tiled fallback for large dims (weights streamed from HBM) -----
        h = h0.astype(compute_dtype)
        for (w, b) in params:
            h = linear_pallas_tiled(h, w, b, apply_relu=True).astype(compute_dtype)
        out = linear_pallas_tiled(h, w_last, b_last, apply_relu=False)

    return out[:M, :out_dim]


def mlp_forward_ref(x, params, last, in_dim, *, compute_dtype=jnp.bfloat16):
    """Plain-JAX reference with the same bf16-input / f32-accum arithmetic."""
    h = x.reshape(-1, in_dim)
    for (w, b) in params:
        h = jnp.maximum(
            jnp.dot(h.astype(compute_dtype), w.astype(compute_dtype),
                    preferred_element_type=jnp.float32) + b, 0.0)
    w_last, b_last = last
    return jnp.dot(h.astype(compute_dtype), w_last.astype(compute_dtype),
                   preferred_element_type=jnp.float32) + b_last


# TODO(synk): get_params/set_params (flat parameter (de)serialization) are
# host-side utilities with no kernel equivalent; only forward() is implemented.

if __name__ == "__main__":
    # Small, module-consistent shapes: batch=2, in_channel=1, img_sz=16,
    # hidden_dim=128, n_layers=2, out_dim=10.
    out_dim, in_channel, img_sz, n_layers, hidden_dim = 10, 1, 16, 2, 128

    key = jax.random.PRNGKey(0)
    key, kx = jax.random.split(key)
    x = jax.random.normal(kx, (2, in_channel, img_sz, img_sz), jnp.float32)

    params, last, in_dim = init_mlp_params(
        key, out_dim=out_dim, in_channel=in_channel, img_sz=img_sz,
        n_layers=n_layers, hidden_dim=hidden_dim)

    logits = mlp_forward(x, params, last, in_dim)
    logits = jax.block_until_ready(logits)
    ref = mlp_forward_ref(x, params, last, in_dim)
    assert logits.shape == (2, out_dim)
    assert jnp.allclose(logits, ref, rtol=1e-2, atol=1e-2)

    # Exercise the tiled fallback kernel once on a larger layer shape.
    key, kx2, kw2, kb2 = jax.random.split(key, 4)
    xt = jax.random.normal(kx2, (64, 512), jnp.float32).astype(jnp.bfloat16)
    wt = (0.05 * jax.random.normal(kw2, (512, 256), jnp.float32)).astype(jnp.bfloat16)
    bt = 0.1 * jax.random.normal(kb2, (256,), jnp.float32)
    yt = jax.block_until_ready(linear_pallas_tiled(xt, wt, bt, apply_relu=True))
    yt_ref = jnp.maximum(
        jnp.dot(xt, wt, preferred_element_type=jnp.float32) + bt, 0.0)
    assert yt.shape == (64, 256)
    assert jnp.allclose(yt, yt_ref, rtol=1e-2, atol=1e-2)

    print("KERNEL_OK")
</pallas_src>

<mosaic_0001>
module attributes {stable_mosaic.version = 11 : i64} {
  func.func @_mlp_fused_kernel(%arg0: i32, %arg1: memref<8x256xf32, #tpu.memory_space<vmem>>, %arg2: memref<256x128xbf16, #tpu.memory_space<vmem>>, %arg3: memref<1x128xf32, #tpu.memory_space<vmem>>, %arg4: memref<128x128xbf16, #tpu.memory_space<vmem>>, %arg5: memref<1x128xf32, #tpu.memory_space<vmem>>, %arg6: memref<128x128xbf16, #tpu.memory_space<vmem>>, %arg7: memref<1x128xf32, #tpu.memory_space<vmem>>, %arg8: memref<8x128xf32, #tpu.memory_space<vmem>>) attributes {dimension_semantics = [#tpu.dimension_semantics<arbitrary>], iteration_bounds = array<i64: 1>, scalar_prefetch = 0 : i64, scratch_operands = 0 : i64, tpu.core_type = #tpu.core_type<tc>, window_params = [{pipeline_mode = #tpu.pipeline_mode<synchronous>, transform_indices = @transform_0, window_bounds = array<i64: 8, 256>}, {pipeline_mode = #tpu.pipeline_mode<synchronous>, transform_indices = @transform_1, window_bounds = array<i64: 256, 128>}, {pipeline_mode = #tpu.pipeline_mode<synchronous>, transform_indices = @transform_2, window_bounds = array<i64: 1, 128>}, {pipeline_mode = #tpu.pipeline_mode<synchronous>, transform_indices = @transform_3, window_bounds = array<i64: 128, 128>}, {pipeline_mode = #tpu.pipeline_mode<synchronous>, transform_indices = @transform_4, window_bounds = array<i64: 1, 128>}, {pipeline_mode = #tpu.pipeline_mode<synchronous>, transform_indices = @transform_5, window_bounds = array<i64: 128, 128>}, {pipeline_mode = #tpu.pipeline_mode<synchronous>, transform_indices = @transform_6, window_bounds = array<i64: 1, 128>}, {pipeline_mode = #tpu.pipeline_mode<synchronous>, transform_indices = @transform_7, window_bounds = array<i64: 8, 128>}]} {
    %c0 = arith.constant 0 : index
    %c0_0 = arith.constant 0 : index
    %0 = vector.load %arg1[%c0, %c0_0] : memref<8x256xf32, #tpu.memory_space<vmem>>, vector<8x256xf32>
    %1 = arith.truncf %0 : vector<8x256xf32> to vector<8x256xbf16>
    %c0_1 = arith.constant 0 : index
    %c0_2 = arith.constant 0 : index
    %2 = vector.load %arg2[%c0_1, %c0_2] : memref<256x128xbf16, #tpu.memory_space<vmem>>, vector<256x128xbf16>
    %c0_3 = arith.constant 0 : index
    %c0_4 = arith.constant 0 : index
    %3 = vector.load %arg3[%c0_3, %c0_4] : memref<1x128xf32, #tpu.memory_space<vmem>>, vector<1x128xf32>
    %cst = arith.constant dense<0.000000e+00> : vector<8x128xf32>
    %4 = tpu.matmul %1, %2, %cst {dimension_numbers = #tpu.dot_dimension_numbers<[1], [0], [0], [1], [0, 0, 1, 1], [], []>} : vector<8x256xbf16>, vector<256x128xbf16>, vector<8x128xf32> -> vector<8x128xf32>
    %5 = vector.broadcast %3 : vector<1x128xf32> to vector<8x128xf32>
    %6 = arith.addf %4, %5 : vector<8x128xf32>
    %cst_5 = arith.constant 0.000000e+00 : f32
    %7 = vector.broadcast %cst_5 : f32 to vector<8x128xf32>
    %8 = arith.maximumf %6, %7 : vector<8x128xf32>
    %9 = arith.truncf %8 : vector<8x128xf32> to vector<8x128xbf16>
    %c0_6 = arith.constant 0 : index
    %c0_7 = arith.constant 0 : index
    %10 = vector.load %arg4[%c0_6, %c0_7] : memref<128x128xbf16, #tpu.memory_space<vmem>>, vector<128x128xbf16>
    %c0_8 = arith.constant 0 : index
    %c0_9 = arith.constant 0 : index
    %11 = vector.load %arg5[%c0_8, %c0_9] : memref<1x128xf32, #tpu.memory_space<vmem>>, vector<1x128xf32>
    %cst_10 = arith.constant dense<0.000000e+00> : vector<8x128xf32>
    %12 = tpu.matmul %9, %10, %cst_10 {dimension_numbers = #tpu.dot_dimension_numbers<[1], [0], [0], [1], [0, 0, 1, 1], [], []>} : vector<8x128xbf16>, vector<128x128xbf16>, vector<8x128xf32> -> vector<8x128xf32>
    %13 = vector.broadcast %11 : vector<1x128xf32> to vector<8x128xf32>
    %14 = arith.addf %12, %13 : vector<8x128xf32>
    %cst_11 = arith.constant 0.000000e+00 : f32
    %15 = vector.broadcast %cst_11 : f32 to vector<8x128xf32>
    %16 = arith.maximumf %14, %15 : vector<8x128xf32>
    %17 = arith.truncf %16 : vector<8x128xf32> to vector<8x128xbf16>
    %c0_12 = arith.constant 0 : index
    %c0_13 = arith.constant 0 : index
    %18 = vector.load %arg6[%c0_12, %c0_13] : memref<128x128xbf16, #tpu.memory_space<vmem>>, vector<128x128xbf16>
    %c0_14 = arith.constant 0 : index
    %c0_15 = arith.constant 0 : index
    %19 = vector.load %arg7[%c0_14, %c0_15] : memref<1x128xf32, #tpu.memory_space<vmem>>, vector<1x128xf32>
    %cst_16 = arith.constant dense<0.000000e+00> : vector<8x128xf32>
    %20 = tpu.matmul %17, %18, %cst_16 {dimension_numbers = #tpu.dot_dimension_numbers<[1], [0], [0], [1], [0, 0, 1, 1], [], []>} : vector<8x128xbf16>, vector<128x128xbf16>, vector<8x128xf32> -> vector<8x128xf32>
    %21 = vector.broadcast %19 : vector<1x128xf32> to vector<8x128xf32>
    %22 = arith.addf %20, %21 : vector<8x128xf32>
    %c0_17 = arith.constant 0 : index
    %c0_18 = arith.constant 0 : index
    %23 = vector.load %arg8[%c0_17, %c0_18] : memref<8x128xf32, #tpu.memory_space<vmem>>, vector<8x128xf32>
    tpu.vector_store %arg8[%c0_17, %c0_18], %22 {strides = array<i32>} : memref<8x128xf32, #tpu.memory_space<vmem>>, vector<8x128xf32>,
    return
  }
  func.func @transform_0(%arg0: i32) -> (i32, i32) {
    %c0_i32 = arith.constant 0 : i32
    %c0_i32_0 = arith.constant 0 : i32
    %c0_i32_1 = arith.constant 0 : i32
    return %c0_i32, %c0_i32_0 : i32, i32
  }
  func.func @transform_1(%arg0: i32) -> (i32, i32) {
    %c0_i32 = arith.constant 0 : i32
    %c0_i32_0 = arith.constant 0 : i32
    %c0_i32_1 = arith.constant 0 : i32
    return %c0_i32, %c0_i32_0 : i32, i32
  }
  func.func @transform_2(%arg0: i32) -> (i32, i32) {
    %c0_i32 = arith.constant 0 : i32
    %c0_i32_0 = arith.constant 0 : i32
    %c0_i32_1 = arith.constant 0 : i32
    return %c0_i32, %c0_i32_0 : i32, i32
  }
  func.func @transform_3(%arg0: i32) -> (i32, i32) {
    %c0_i32 = arith.constant 0 : i32
    %c0_i32_0 = arith.constant 0 : i32
    %c0_i32_1 = arith.constant 0 : i32
    return %c0_i32, %c0_i32_0 : i32, i32
  }
  func.func @transform_4(%arg0: i32) -> (i32, i32) {
    %c0_i32 = arith.constant 0 : i32
    %c0_i32_0 = arith.constant 0 : i32
    %c0_i32_1 = arith.constant 0 : i32
    return %c0_i32, %c0_i32_0 : i32, i32
  }
  func.func @transform_5(%arg0: i32) -> (i32, i32) {
    %c0_i32 = arith.constant 0 : i32
    %c0_i32_0 = arith.constant 0 : i32
    %c0_i32_1 = arith.constant 0 : i32
    return %c0_i32, %c0_i32_0 : i32, i32
  }
  func.func @transform_6(%arg0: i32) -> (i32, i32) {
    %c0_i32 = arith.constant 0 : i32
    %c0_i32_0 = arith.constant 0 : i32
    %c0_i32_1 = arith.constant 0 : i32
    return %c0_i32, %c0_i32_0 : i32, i32
  }
  func.func @transform_7(%arg0: i32) -> (i32, i32) {
    %c0_i32 = arith.constant 0 : i32
    %c0_i32_0 = arith.constant 0 : i32
    %c0_i32_1 = arith.constant 0 : i32
    return %c0_i32, %c0_i32_0 : i32, i32
  }
}

</mosaic_0001>

<bundles_post_ra>
// kernel: tpu_custom_call.1
= control target key start
LH: loop header
LB: loop body
LE: loop exit
PB: predicated region body
PF: predicated region fallthrough
CT: control target
= control target key end

     0   :  { %12 = vsyncpa [#allocation3], 0  ;;  %s923_s0 = inlined_call_operand.hbm [shape: f32[8,256], index: 0, kind: input, shape index: {}]   ;;  %s924_s1 = inlined_call_operand.hbm [shape: bf16[256,128], index: 1, kind: input, shape index: {}]   ;;  %s925_s2 = inlined_call_operand.vmem [shape: f32[1,128], index: 2, kind: input, shape index: {}]   ;;  %s926_s3 = inlined_call_operand.hbm [shape: bf16[128,128], index: 3, kind: input, shape index: {}]   ;;  %s927_s4 = inlined_call_operand.vmem [shape: f32[1,128], index: 4, kind: input, shape index: {}]   ;;  %s928_s5 = inlined_call_operand.hbm [shape: bf16[128,128], index: 5, kind: input, shape index: {}]   ;;  %s929_s6 = inlined_call_operand.vmem [shape: f32[1,128], index: 6, kind: input, shape index: {}]   ;;  %s930_s7 = inlined_call_operand.hbm [shape: f32[8,128], index: 7, kind: output, shape index: {}]  }
   0x1   :  { %13 = vsyncpa [#allocation6], 0 }
   0x2   :  { %14 = vsyncpa [#allocation9], 0 }
   0x3   :  { %15 = vsyncpa [#allocation4], 0  ;;  %s778_s24 = smov [#allocation5]   ;;  %s660_s28 = scalar_lea.hbm %s924_s1, 2048 }
   0x4   :  { %s31_s25 = sshll.u32 %s778_s24, 4  ;;  %p661_p0 = scmp.ne.s32.totalorder %s924_s1, %s660_s28  ;;  %s32_s25 = int_to_ptr.vmem [resolvable:$true] %s31_s25 }
   0x5   :  { %p664_p1 = scmp.lt.u32.totalorder %s660_s28, %s924_s1 }
   0x7   :  { %p666_p2 = pnand %p664_p1, %p661_p0 }
   0x9   :  { %669 = shalt.err (!%p666_p2)
}
   0xa   :  { %s670_s10 = scalar_lea.vmem %s32_s25, 2048  ;;  %p675_p4 = scmp.lt.s32.totalorder %s32_s25, %s32_s25 }
   0xb   :  { %p671_p3 = scmp.ne.s32.totalorder %s32_s25, %s670_s10  ;;  %p676_p5 = scmp.lt.s32.totalorder %s670_s10, %s670_s10 }
   0xd   :  { %p677_p6 = por %p676_p5, %p675_p4 }
   0xf   :  { %p678_p7 = pnand %p677_p6, %p671_p3 }
  0x11   :  { %681 = shalt.err (!%p678_p7)
}
  0x12   :  { %s779_s11 = smov 64   ;;  %s780_s12 = smov 4  }
  0x13   :  { %37 = dma.hbm_to_vmem [thread:$0]  %s924_s1, 2048, %s32_s25, [#allocation6], %s779_s11, %s779_s11, %s780_s12  }
  0x14   :  { %s781_s15 = smov [#allocation2]   ;;  %s782_s17 = smov [#allocation7]  }
  0x15   :  { %s22_s16 = sshll.u32 %s781_s15, 4  ;;  %s45_s18 = sshll.u32 %s782_s17, 4  ;;  %s23_s16 = int_to_ptr.vmem [resolvable:$true] %s22_s16  ;;  %s46_s18 = int_to_ptr.vmem [resolvable:$true] %s45_s18 }
  0x16   :  { %s682_s21 = scalar_lea.hbm %s923_s0, 256 }
  0x17   :  { %p683_p8 = scmp.ne.s32.totalorder %s923_s0, %s682_s21  ;;  %p686_p9 = scmp.lt.u32.totalorder %s682_s21, %s923_s0 }
  0x19   :  { %p688_p10 = pnand %p686_p9, %p683_p8 }
  0x1b   :  { %691 = shalt.err (!%p688_p10)
}
  0x1c   :  { %s692_s1 = scalar_lea.vmem %s23_s16, 256  ;;  %p697_p12 = scmp.lt.s32.totalorder %s23_s16, %s23_s16 }
  0x1d   :  { %p693_p11 = scmp.ne.s32.totalorder %s23_s16, %s692_s1  ;;  %p698_p13 = scmp.lt.s32.totalorder %s692_s1, %s692_s1 }
  0x1f   :  { %p699_p0 = por %p698_p13, %p697_p12 }
  0x21   :  { %p700_p1 = pnand %p699_p0, %p693_p11 }
  0x23   :  { %703 = shalt.err (!%p700_p1)
}
  0x24   :  { %25 = dma.hbm_to_vmem [thread:$0]  %s923_s0, 256, %s23_s16, [#allocation3]  }
  0x25   :  { %s704_s30 = scalar_lea.hbm %s926_s3, 1024 }
  0x26   :  { %p705_p2 = scmp.ne.s32.totalorder %s926_s3, %s704_s30  ;;  %p708_p3 = scmp.lt.u32.totalorder %s704_s30, %s926_s3 }
  0x28   :  { %p710_p4 = pnand %p708_p3, %p705_p2 }
  0x2a   :  { %713 = shalt.err (!%p710_p4)
}
  0x2b   :  { %s714_s14 = scalar_lea.vmem %s46_s18, 1024  ;;  %p719_p6 = scmp.lt.s32.totalorder %s46_s18, %s46_s18 }
  0x2c   :  { %p715_p5 = scmp.ne.s32.totalorder %s46_s18, %s714_s14  ;;  %p720_p7 = scmp.lt.s32.totalorder %s714_s14, %s714_s14 }
  0x2e   :  { %p721_p8 = por %p720_p7, %p719_p6 }
  0x30   :  { %p722_p9 = pnand %p721_p8, %p715_p5 }
  0x32   :  { %725 = shalt.err (!%p722_p9)
}
  0x33   :  { %51 = dma.hbm_to_vmem [thread:$0]  %s926_s3, 1024, %s46_s18, [#allocation6], %s779_s11, %s779_s11, %s780_s12  }
  0x34   :  { %s783_s16 = smov [#allocation8]   ;;  %s726_s21 = scalar_lea.hbm %s928_s5, 1024 }
  0x35   :  { %s59_s17 = sshll.u32 %s783_s16, 4  ;;  %p727_p10 = scmp.ne.s32.totalorder %s928_s5, %s726_s21  ;;  %s60_s17 = int_to_ptr.vmem [resolvable:$true] %s59_s17 }
  0x36   :  { %p730_p11 = scmp.lt.u32.totalorder %s726_s21, %s928_s5 }
  0x38   :  { %p732_p12 = pnand %p730_p11, %p727_p10 }
  0x3a   :  { %735 = shalt.err (!%p732_p12)
}
  0x3b   :  { %s736_s1 = scalar_lea.vmem %s60_s17, 1024  ;;  %p741_p0 = scmp.lt.s32.totalorder %s60_s17, %s60_s17 }
  0x3c   :  { %p737_p13 = scmp.ne.s32.totalorder %s60_s17, %s736_s1  ;;  %p742_p1 = scmp.lt.s32.totalorder %s736_s1, %s736_s1 }
  0x3e   :  { %p743_p2 = por %p742_p1, %p741_p0 }
  0x40   :  { %p744_p3 = pnand %p743_p2, %p737_p13 }
  0x42   :  { %747 = shalt.err (!%p744_p3)
}
  0x43   :  { %65 = dma.hbm_to_vmem [thread:$0]  %s928_s5, 1024, %s60_s17, [#allocation9], %s779_s11, %s779_s11, %s780_s12  }
  0x44   :  { %770 = dma.done.wait [#allocation3], 256  }
  0x45   :  { %771 = vsyncadd [#allocation3], 4294967040 }
  0x46   :  { %772 = dma.done.wait [#allocation6], 3072  }
  0x47   :  { %773 = vsyncadd [#allocation6], 4294964224 }
  0x48   :  { %774 = dma.done.wait [#allocation9], 1024  }
  0x49   :  { %775 = vsyncadd [#allocation9], 4294966272  ;;  %v784_v0 = vmov 0.0   ;;  %v628_v1 = vld [vmem:[#allocation5 + $0x40] sm:$0xff]   ;;  %v630_v3 = vld [vmem:[#allocation5 + $0x48] sm:$0xff]   ;;  %vm785_vm0 = vmmov 0  }
  0x4a   :  { %579 = vmatprep.subr.bf16.mxu1 %v784_v0  ;;  %v629_v2 = vld [vmem:[#allocation5] sm:$0xff]   ;;  %539 = vmatprep.subr.bf16.mxu0 %v628_v1  ;;  %v631_v4 = vld [vmem:[#allocation5 + $0x8] sm:$0xff]   ;;  %v632_v5 = vld [vmem:[#allocation5 + $0x50] sm:$0xff]   ;;  %s786_s28 = smov [#allocation10]  }
  0x4b   :  { %540 = vmatpush3.bf16.msra.mxu0 %v629_v2  ;;  %v633_v6 = vld [vmem:[#allocation5 + $0x10] sm:$0xff]   ;;  %v634_v7 = vld [vmem:[#allocation5 + $0x58] sm:$0xff]   ;;  %v636_v9 = vld [vmem:[#allocation5 + $0x60] sm:$0xff]   ;;  %595 = vmatprep.mubr.msk.bf16.mxu1 %vm785_vm0, %v784_v0  ;;  %s493_s29 = sshll.u32 %s786_s28, 4  ;;  %s494_s29 = int_to_ptr.vmem [resolvable:$true] %s493_s29 }
  0x4c   :  { %541 = vmatprep.subr.bf16.mxu0 %v630_v3  ;;  %v635_v8 = vld [vmem:[#allocation5 + $0x18] sm:$0xff]   ;;  %v637_v10 = vld [vmem:[#allocation5 + $0x20] sm:$0xff]   ;;  %v638_v11 = vld [vmem:[#allocation5 + $0x68] sm:$0xff]   ;;  %p753_p5 = scmp.lt.s32.totalorder %s494_s29, %s494_s29 }
  0x4d   :  { %v82_v12 = vld [vmem:[#allocation2 + $0x8] sm:$0xff]  ;;  %v644_v14 = vld [vmem:[#allocation7] sm:$0xff]   ;;  %v639_v15 = vld [vmem:[#allocation5 + $0x28] sm:$0xff]  }
  0x4e   :  { %v84_v13 = vpack.c.bf16 %v82_v12, %v82_v12  ;;  %v640_v16 = vld [vmem:[#allocation5 + $0x70] sm:$0xff]   ;;  %580 = vmatpush3.bf16.msra.mxu1 %v644_v14  ;;  %v645_v17 = vld [vmem:[#allocation7 + $0x8] sm:$0xff]   ;;  %v642_v19 = vld [vmem:[#allocation5 + $0x78] sm:$0xff]  }
  0x4f   :  { %542 = vmatpush3.bf16.msra.mxu0 %v631_v4  ;;  %v641_v18 = vld [vmem:[#allocation5 + $0x30] sm:$0xff]   ;;  %581 = vmatprep.subr.bf16.mxu1 %v784_v0  ;;  %v643_v21 = vld [vmem:[#allocation5 + $0x38] sm:$0xff]   ;;  %v648_v25 = vld [vmem:[#allocation7 + $0x20] sm:$0xff]  }
  0x50   :  { %543 = vmatprep.subr.bf16.mxu0 %v632_v5  ;;  %252 = vmatprep.mubr.bf16.mxu0 %v84_v13  ;;  %v646_v20 = vld [vmem:[#allocation7 + $0x10] sm:$0xff]   ;;  %v647_v23 = vld [vmem:[#allocation7 + $0x18] sm:$0xff]   ;;  %v649_v26 = vld [vmem:[#allocation7 + $0x28] sm:$0xff]  }
  0x51   :  { %v81_v22 = vld [vmem:[#allocation2] sm:$0xff]  ;;  %v651_v28 = vld [vmem:[#allocation7 + $0x38] sm:$0xff]   ;;  %v652_v29 = vld [vmem:[#allocation8] sm:$0xff]  }
  0x52   :  { %582 = vmatpush3.bf16.msra.mxu1 %v645_v17  ;;  %v83_v24 = vpack.c.bf16 %v81_v22, %v81_v22  ;;  %v650_v27 = vld [vmem:[#allocation7 + $0x30] sm:$0xff]   ;;  %v653_v30 = vld [vmem:[#allocation8 + $0x8] sm:$0xff]   ;;  %v655_v32 = vld [vmem:[#allocation8 + $0x18] sm:$0xff]  }
  0x53   :  { %544 = vmatpush3.bf16.msra.mxu0 %v633_v6  ;;  %583 = vmatprep.subr.bf16.mxu1 %v784_v0  ;;  %v654_v31 = vld [vmem:[#allocation8 + $0x10] sm:$0xff]   ;;  %v656_v33 = vld [vmem:[#allocation8 + $0x20] sm:$0xff]   ;;  %v657_v34 = vld [vmem:[#allocation8 + $0x28] sm:$0xff]  }
  0x54   :  { %545 = vmatprep.subr.bf16.mxu0 %v634_v7  ;;  %v504_v36 = vld [vmem:[%s925_s2] ss:$0 sm:$0xff]  ;;  %v659_v45 = vld [vmem:[#allocation8 + $0x38] sm:$0xff]  }
  0x55   :  { %v658_v44 = vld [vmem:[#allocation8 + $0x30] sm:$0xff]  }
  0x56   :  { %584 = vmatpush3.bf16.msra.mxu1 %v646_v20  ;;  %v521_v46 = vld [vmem:[%s927_s4] ss:$0 sm:$0xff]  ;;  %s748_s4 = scalar_lea.vmem %s494_s29, 128 }
  0x57   :  { %546 = vmatpush3.bf16.msra.mxu0 %v635_v8  ;;  %585 = vmatprep.subr.bf16.mxu1 %v784_v0  ;;  %v530_v54 = vld [vmem:[%s929_s6] ss:$0 sm:$0xff]  ;;  %p749_p4 = scmp.ne.s32.totalorder %s494_s29, %s748_s4  ;;  %p754_p6 = scmp.lt.s32.totalorder %s748_s4, %s748_s4 }
  0x58   :  { %547 = vmatprep.subr.bf16.mxu0 %v636_v9 }
  0x59   :  { %p755_p7 = por %p754_p6, %p753_p5 }
  0x5a   :  { %586 = vmatpush3.bf16.msra.mxu1 %v647_v23 }
  0x5b   :  { %548 = vmatpush3.bf16.msra.mxu0 %v637_v10  ;;  %587 = vmatprep.subr.bf16.mxu1 %v784_v0  ;;  %p756_p8 = pnand %p755_p7, %p749_p4 }
  0x5c   :  { %549 = vmatprep.subr.bf16.mxu0 %v638_v11 }
  0x5e   :  { %588 = vmatpush3.bf16.msra.mxu1 %v648_v25 }
  0x5f   :  { %550 = vmatpush3.bf16.msra.mxu0 %v639_v15  ;;  %589 = vmatprep.subr.bf16.mxu1 %v784_v0 }
  0x60   :  { %551 = vmatprep.subr.bf16.mxu0 %v640_v16 }
  0x62   :  { %590 = vmatpush3.bf16.msra.mxu1 %v649_v26 }
  0x63   :  { %552 = vmatpush3.bf16.msra.mxu0 %v641_v18  ;;  %591 = vmatprep.subr.bf16.mxu1 %v784_v0 }
  0x64   :  { %553 = vmatprep.subr.bf16.mxu0 %v642_v19 }
  0x66   :  { %592 = vmatpush3.bf16.msra.mxu1 %v650_v27 }
  0x67   :  { %554 = vmatpush3.bf16.msra.mxu0 %v643_v21  ;;  %593 = vmatprep.subr.bf16.mxu1 %v784_v0 }
  0x68   :  { %599 = vmatprep.subr.bf16.mxu0 %v784_v0 }
  0x6a   :  { %253 = vmatmul.mubr.bf16.vlgmr.msra.gmra.mrb[0].mxu0 %v83_v24  ;;  %594 = vmatpush3.bf16.msra.mxu1 %v651_v28 }
  0x6b   :  { %615 = vmatprep.mubr.msk.bf16.mxu0 %vm785_vm0, %v784_v0  ;;  %600 = vmatpush3.bf16.msra.mxu0 %v652_v29 }
  0x6c   :  { %601 = vmatprep.subr.bf16.mxu0 %v784_v0 }
  0x6f   :  { %602 = vmatpush3.bf16.msra.mxu0 %v653_v30 }
  0x70   :  { %603 = vmatprep.subr.bf16.mxu0 %v784_v0 }
  0x73   :  { %604 = vmatpush3.bf16.msra.mxu0 %v654_v31 }
  0x74   :  { %605 = vmatprep.subr.bf16.mxu0 %v784_v0 }
  0x77   :  { %606 = vmatpush3.bf16.msra.mxu0 %v655_v32 }
  0x78   :  { %607 = vmatprep.subr.bf16.mxu0 %v784_v0 }
  0x7b   :  { %608 = vmatpush3.bf16.msra.mxu0 %v656_v33 }
  0x7c   :  { %609 = vmatprep.subr.bf16.mxu0 %v784_v0 }
  0x7f   :  { %610 = vmatpush3.bf16.msra.mxu0 %v657_v34 }
  0x80   :  { %611 = vmatprep.subr.bf16.mxu0 %v784_v0 }
  0x83   :  { %612 = vmatpush3.bf16.msra.mxu0 %v658_v44 }
  0x84   :  { %613 = vmatprep.subr.bf16.mxu0 %v784_v0 }
  0x87   :  { %614 = vmatpush3.bf16.msra.mxu0 %v659_v45 }
 0x13d   :  { %v555_v35 = vpop.f32.mrb[0].mxu0 }
 0x13e   :  { %v556_v37 = vpop.f32.mrb[1].mxu0 }
 0x13f   :  { %v557_v38 = vadd.f32 %v556_v37, %v555_v35  ;;  %v558_v39 = vpop.f32.mrb[2].mxu0 }
 0x140   :  { %v559_v40 = vpop.f32.mrb[3].mxu0 }
 0x141   :  { %v255_v41 = vadd.f32 %v557_v38, %v504_v36 }
 0x143   :  { %v260_v42 = vmax.f32 %v255_v41, 0.0 }
 0x145   :  { %v261_v43 = vpack.c.bf16 %v260_v42, %v260_v42 }
 0x147   :  { %596 = vmatmul.mubr.bf16.vlgmr.msra.gmra.mrb[0].mxu1 %v261_v43 }
 0x21a   :  { %v367_v47 = vpop.f32.mrb[0].mxu1 }
 0x21b   :  { %v368_v48 = vadd.f32 %v521_v46, %v367_v47  ;;  %v597_v49 = vpop.f32.mrb[1].mxu1 }
 0x21c   :  { %v370_v50 = vpop.f32.mrb[2].mxu1 }
 0x21d   :  { %v373_v51 = vmax.f32 %v368_v48, 0.0  ;;  %v598_v52 = vpop.f32.mrb[3].mxu1 }
 0x21f   :  { %v374_v53 = vpack.c.bf16 %v373_v51, %v373_v51 }
 0x221   :  { %616 = vmatmul.mubr.bf16.vlgmr.msra.gmra.mrb[4].mxu0 %v374_v53 }
 0x2f4   :  { %v480_v55 = vpop.f32.mrb[4].mxu0 }
 0x2f5   :  { %v481_v56 = vadd.f32 %v530_v54, %v480_v55  ;;  %v617_v57 = vpop.f32.mrb[5].mxu0 }
 0x2f6   :  { %v483_v58 = vpop.f32.mrb[6].mxu0 }
 0x2f7   :  { %486 = vst [vmem:[#allocation10] sm:$0xff] %v481_v56  ;;  %v618_v59 = vpop.f32.mrb[7].mxu0 }
 0x2f8   :  { %759 = shalt.err (!%p756_p8)
}
 0x2f9   :  { %s760_s6 = scalar_lea.hbm %s930_s7, 128 }
 0x2fa   :  { %p761_p9 = scmp.ne.s32.totalorder %s930_s7, %s760_s6  ;;  %p764_p10 = scmp.lt.u32.totalorder %s760_s6, %s930_s7 }
 0x2fc   :  { %p766_p11 = pnand %p764_p10, %p761_p9 }
 0x2fe   :  { %769 = shalt.err (!%p766_p11)
}
 0x2ff   :  { %496 = dma.vmem_to_hbm [thread:$0]  %s494_s29, 128, %s930_s7, [#allocation4]  }
 0x300   :  { %776 = dma.done.wait [#allocation4], 128  }
 0x301   :  { %777 = vsyncadd [#allocation4], 4294967168 }
 0x302   :  { %500 = vsyncpa [#allocation3], 1 }
 0x303   :  { %501 = vsyncpa [#allocation6], 1 }
 0x304   :  { %502 = vsyncpa [#allocation9], 1 }
 0x305   :  { %503 = vsyncpa [#allocation4], 1 }

</bundles_post_ra>
